<compile_context>
chip_gen: v7x
topology: tpu7x:2x2x1
jax: 0.10.0
libtpu: 0.0.40
codegen_flags: <defaults>
</compile_context>

<pallas_src>
import functools

import jax
import jax.numpy as jnp
import numpy as np
from jax import lax
from jax.experimental import pallas as pl
from jax.experimental.pallas import tpu as pltpu


# --------------------------- parameter preparation ---------------------------
def _banded_weights(w_hwio, W):
    """(3, 3, Cin, Cout) conv kernel -> (3, W*Cin, W*Cout) per-dy banded
    matmul weights.  The horizontal SAME padding is baked into the band:
    out[wo, co] = sum_{dx, ci} x[wo+dx-1, ci] * w[dy, dx, ci, co], with
    out-of-range columns simply absent from the band."""
    Cin, Cout = int(w_hwio.shape[2]), int(w_hwio.shape[3])
    mat = jnp.zeros((3, W, Cin, W, Cout), w_hwio.dtype)
    wo = np.arange(W)
    for dy in range(3):
        for dx in range(3):
            wi = wo + dx - 1
            valid = (wi >= 0) & (wi < W)
            mat = mat.at[dy, wi[valid], :, wo[valid], :].set(w_hwio[dy, dx])
    return mat.reshape(3, W * Cin, W * Cout)


def _tile_bias(b, W):
    b = jnp.asarray(b, jnp.float32)
    return jnp.tile(b, W).reshape(1, W * b.shape[0])      # lane-packed (1, W*Cout)


def make_lateral_params(alphas, w1, b1, w2, b2, wr=None, br=None, *, W,
                        matmul_dtype=jnp.bfloat16):
    """Precompute banded weights / tiled biases once (hoist out of per-call path)."""
    params = dict(
        alphas=jnp.asarray(alphas, jnp.float32),
        w1=_banded_weights(jnp.asarray(w1, jnp.float32), W).astype(matmul_dtype),
        b1=_tile_bias(b1, W),
        w2=_banded_weights(jnp.asarray(w2, jnp.float32), W).astype(matmul_dtype),
        b2=_tile_bias(b2, W),
    )
    if wr is not None:
        params["wr"] = _banded_weights(jnp.asarray(wr, jnp.float32), W).astype(matmul_dtype)
        params["br"] = _tile_bias(br, W)
    return params


def _pick_block_images(N, H, target_rows=256):
    """Largest divisor B of N with B*H <= target_rows (MXU M-dimension).
    (On v7x one may additionally prefer an even grid length N // B.)"""
    best = 1
    for b in range(1, N + 1):
        if N % b == 0 and b * H <= target_rows:
            best = b
    return best


# --------------------------------- kernel ------------------------------------
def _lateral_kernel(alpha_ref, x_ref, w1_ref, b1_ref, w2_ref, b2_ref, *rest,
                    use_proj, BH, H, Wc_out):
    if use_proj:
        wr_ref, br_ref, o_ref = rest
    else:
        (o_ref,) = rest

    a1 = alpha_ref[0]                 # PReLU #1 slope (scalar, SMEM)
    a2 = alpha_ref[1]                 # PReLU #2 slope (scalar, SMEM)
    x = x_ref[...]                    # (B*H, W*Cin), f32, lane-packed
    mm_dtype = w1_ref.dtype

    # Per-image vertical-boundary masks.  Row r of image b sits at flat index
    # b*H + r.  Built from a sublane iota + a few static compares (no mod).
    g = lax.broadcasted_iota(jnp.int32, (BH, 1), 0)
    first = (g == 0)
    last = (g == H - 1)
    for b in range(1, BH // H):
        first = jnp.logical_or(first, g == b * H)
        last = jnp.logical_or(last, g == b * H + H - 1)
    not_first = jnp.where(first, 0.0, 1.0)      # (BH, 1) f32
    not_last = jnp.where(last, 0.0, 1.0)        # (BH, 1) f32

    zrow = jnp.zeros((1, Wc_out), jnp.float32)

    def conv3x3(inp, w_ref, b_ref):
        """3x3 SAME conv: three banded matmuls (dy = 0,1,2) + dy row shifts."""
        lhs = inp.astype(mm_dtype)
        q0 = jnp.dot(lhs, w_ref[0], preferred_element_type=jnp.float32)
        q1 = jnp.dot(lhs, w_ref[1], preferred_element_type=jnp.float32)
        q2 = jnp.dot(lhs, w_ref[2], preferred_element_type=jnp.float32)
        # out[b*H + r] = q0[b*H + r - 1] + q1[b*H + r] + q2[b*H + r + 1],
        # with rows outside the image contributing zero (vertical SAME pad).
        q0s = jnp.concatenate([zrow, q0[:BH - 1, :]], axis=0) * not_first
        q2s = jnp.concatenate([q2[1:, :], zrow], axis=0) * not_last
        return q1 + q0s + q2s + b_ref[...]

    # main branch: PReLU -> conv1 -> PReLU -> conv2
    y = jnp.where(x >= 0, x, a1 * x)                      # PReLU #1
    h = conv3x3(y, w1_ref, b1_ref)                        # (BH, W*Cout) f32
    h = jnp.where(h >= 0, h, a2 * h)                      # PReLU #2
    fx = conv3x3(h, w2_ref, b2_ref)

    # residual branch (raw x)
    if use_proj:
        res = conv3x3(x, wr_ref, br_ref)
    else:
        res = x                                           # Cin == Cout here

    o_ref[...] = (fx + res).astype(o_ref.dtype)


# -------------------------------- wrappers ------------------------------------
def lateral_block_nhwc(params, x_nhwc, *, block_images=None):
    """LateralBlock forward on NHWC input, returns NHWC output."""
    N, H, W, Cin = x_nhwc.shape
    Cout = params["b1"].shape[1] // W
    use_proj = "wr" in params
    assert params["w1"].shape == (3, W * Cin, W * Cout)
    if not use_proj:
        assert Cin == Cout, "identity residual requires ch_in == ch_out"

    B = block_images or _pick_block_images(N, H)
    assert N % B == 0
    BH = B * H
    Wc_in, Wc_out = W * Cin, W * Cout

    # Lane-packed 2-D slab: row = one image row, lanes = W*C.
    x2d = x_nhwc.reshape(N * H, Wc_in).astype(jnp.float32)

    in_specs = [
        pl.BlockSpec(memory_space=pltpu.MemorySpace.SMEM),            # alphas
        pl.BlockSpec((BH, Wc_in), lambda n: (n, 0)),                  # x slab
        pl.BlockSpec((3, Wc_in, Wc_out), lambda n: (0, 0, 0)),        # w1 (per-dy)
        pl.BlockSpec((1, Wc_out), lambda n: (0, 0)),                  # b1
        pl.BlockSpec((3, Wc_out, Wc_out), lambda n: (0, 0, 0)),       # w2 (per-dy)
        pl.BlockSpec((1, Wc_out), lambda n: (0, 0)),                  # b2
    ]
    args = [params["alphas"], x2d, params["w1"], params["b1"],
            params["w2"], params["b2"]]
    if use_proj:
        in_specs += [
            pl.BlockSpec((3, Wc_in, Wc_out), lambda n: (0, 0, 0)),    # wr (per-dy)
            pl.BlockSpec((1, Wc_out), lambda n: (0, 0)),              # br
        ]
        args += [params["wr"], params["br"]]

    kernel = functools.partial(_lateral_kernel, use_proj=use_proj,
                               BH=BH, H=H, Wc_out=Wc_out)

    out2d = pl.pallas_call(
        kernel,
        out_shape=jax.ShapeDtypeStruct((N * H, Wc_out), jnp.float32),
        grid_spec=pltpu.PrefetchScalarGridSpec(
            num_scalar_prefetch=0,
            grid=(N // B,),
            in_specs=in_specs,
            out_specs=pl.BlockSpec((BH, Wc_out), lambda n: (n, 0)),
        ),
        compiler_params=pltpu.CompilerParams(
            dimension_semantics=("parallel",),
        ),
    )(*args)

    return out2d.reshape(N, H, W, Cout)


def lateral_block(x_nchw, alphas, w1, b1, w2, b2, wr=None, br=None, *,
                  matmul_dtype=jnp.bfloat16, block_images=None):
    """NCHW convenience wrapper matching the PyTorch module interface.
    (For stacked blocks, prefer make_lateral_params + lateral_block_nhwc to
    avoid re-building banded weights and the NCHW<->NHWC transposes.)"""
    N, Cin, H, W = x_nchw.shape
    params = make_lateral_params(alphas, w1, b1, w2, b2, wr, br, W=W,
                                 matmul_dtype=matmul_dtype)
    x_nhwc = jnp.transpose(x_nchw, (0, 2, 3, 1))
    y = lateral_block_nhwc(params, x_nhwc, block_images=block_images)
    return jnp.transpose(y, (0, 3, 1, 2))


# ---------------------- pure-JAX reference (for checking) ---------------------
def _prelu(x, a):
    return jnp.maximum(x, 0.0) + a * jnp.minimum(x, 0.0)


def _conv_ref(x_nhwc, w_hwio, b):
    y = lax.conv_general_dilated(x_nhwc, w_hwio, window_strides=(1, 1),
                                 padding="SAME",
                                 dimension_numbers=("NHWC", "HWIO", "NHWC"))
    return y + b


def lateral_block_ref(x_nchw, alphas, w1, b1, w2, b2, wr=None, br=None):
    x = jnp.transpose(x_nchw, (0, 2, 3, 1)).astype(jnp.float32)
    fx = _conv_ref(_prelu(x, alphas[0]), w1, b1)
    fx = _conv_ref(_prelu(fx, alphas[1]), w2, b2)
    res = x if wr is None else _conv_ref(x, wr, br)
    return jnp.transpose(fx + res, (0, 3, 1, 2))


if __name__ == "__main__":
    # Small shapes consistent with the module: N=2, ch_in=4, ch_out=8, 16x16.
    N, Cin, Cout, H, W = 2, 4, 8, 16, 16

    key = jax.random.PRNGKey(0)
    kx, k1, k2, k3, kb1, kb2, kb3 = jax.random.split(key, 7)

    x = jax.random.normal(kx, (N, Cin, H, W), dtype=jnp.float32)

    # PyTorch PReLU default slope = 0.25 (one per PReLU instance).
    alphas = jnp.array([0.25, 0.25], dtype=jnp.float32)
    w1 = jax.random.normal(k1, (3, 3, Cin, Cout), dtype=jnp.float32) * 0.1
    b1 = jax.random.normal(kb1, (Cout,), dtype=jnp.float32) * 0.1
    w2 = jax.random.normal(k2, (3, 3, Cout, Cout), dtype=jnp.float32) * 0.1
    b2 = jax.random.normal(kb2, (Cout,), dtype=jnp.float32) * 0.1
    wr = jax.random.normal(k3, (3, 3, Cin, Cout), dtype=jnp.float32) * 0.1
    br = jax.random.normal(kb3, (Cout,), dtype=jnp.float32) * 0.1

    ref = jax.block_until_ready(lateral_block_ref(x, alphas, w1, b1, w2, b2, wr, br))

    # 1) Projection-residual path, f32 MXU operands -> tight match.
    out_f32 = jax.block_until_ready(
        lateral_block(x, alphas, w1, b1, w2, b2, wr, br, matmul_dtype=jnp.float32))
    assert out_f32.shape == (N, Cout, H, W), out_f32.shape
    np.testing.assert_allclose(np.asarray(out_f32), np.asarray(ref),
                               rtol=1e-4, atol=1e-4)

    # 2) Same path with bf16 MXU operands (per v6e/v7x perf guidance),
    #    f32 accumulation -> looser tolerance.
    out_bf16 = jax.block_until_ready(
        lateral_block(x, alphas, w1, b1, w2, b2, wr, br, matmul_dtype=jnp.bfloat16))
    np.testing.assert_allclose(np.asarray(out_bf16), np.asarray(ref),
                               rtol=5e-2, atol=5e-2)

    # 3) Identity-residual path (ch_in == ch_out): no projection conv.
    xi = jax.random.normal(kx, (N, Cout, H, W), dtype=jnp.float32)
    w1i = jax.random.normal(k1, (3, 3, Cout, Cout), dtype=jnp.float32) * 0.1
    ref_i = jax.block_until_ready(lateral_block_ref(xi, alphas, w1i, b1, w2, b2))
    out_i = jax.block_until_ready(
        lateral_block(xi, alphas, w1i, b1, w2, b2, matmul_dtype=jnp.float32))
    np.testing.assert_allclose(np.asarray(out_i), np.asarray(ref_i),
                               rtol=1e-4, atol=1e-4)

    print("KERNEL_OK")
</pallas_src>

<mosaic_0001>
module attributes {stable_mosaic.version = 11 : i64} {
  func.func @_lateral_kernel(%arg0: i32, %arg1: memref<2xf32, #tpu.memory_space<smem>>, %arg2: memref<32x64xf32, #tpu.memory_space<vmem>>, %arg3: memref<3x64x128xf32, #tpu.memory_space<vmem>>, %arg4: memref<1x128xf32, #tpu.memory_space<vmem>>, %arg5: memref<3x128x128xf32, #tpu.memory_space<vmem>>, %arg6: memref<1x128xf32, #tpu.memory_space<vmem>>, %arg7: memref<3x64x128xf32, #tpu.memory_space<vmem>>, %arg8: memref<1x128xf32, #tpu.memory_space<vmem>>, %arg9: memref<32x128xf32, #tpu.memory_space<vmem>>) attributes {dimension_semantics = [#tpu.dimension_semantics<parallel>], iteration_bounds = array<i64: 1>, scalar_prefetch = 0 : i64, scratch_operands = 0 : i64, tpu.core_type = #tpu.core_type<tc>, window_params = [{transform_indices = @transform_0, window_bounds = array<i64: 2>}, {transform_indices = @transform_1, window_bounds = array<i64: 32, 64>}, {pipeline_mode = #tpu.pipeline_mode<synchronous>, transform_indices = @transform_2, window_bounds = array<i64: 3, 64, 128>}, {pipeline_mode = #tpu.pipeline_mode<synchronous>, transform_indices = @transform_3, window_bounds = array<i64: 1, 128>}, {pipeline_mode = #tpu.pipeline_mode<synchronous>, transform_indices = @transform_4, window_bounds = array<i64: 3, 128, 128>}, {pipeline_mode = #tpu.pipeline_mode<synchronous>, transform_indices = @transform_5, window_bounds = array<i64: 1, 128>}, {pipeline_mode = #tpu.pipeline_mode<synchronous>, transform_indices = @transform_6, window_bounds = array<i64: 3, 64, 128>}, {pipeline_mode = #tpu.pipeline_mode<synchronous>, transform_indices = @transform_7, window_bounds = array<i64: 1, 128>}, {transform_indices = @transform_8, window_bounds = array<i64: 32, 128>}]} {
    %c0 = arith.constant 0 : index
    %0 = memref.load %arg1[%c0] : memref<2xf32, #tpu.memory_space<smem>>
    %c1 = arith.constant 1 : index
    %1 = memref.load %arg1[%c1] : memref<2xf32, #tpu.memory_space<smem>>
    %c0_0 = arith.constant 0 : index
    %c0_1 = arith.constant 0 : index
    %2 = vector.load %arg2[%c0_0, %c0_1] : memref<32x64xf32, #tpu.memory_space<vmem>>, vector<32x64xf32>
    %3 = tpu.iota {dimensions = array<i32: 0>} : vector<32x1xi32>
    %c0_i32 = arith.constant 0 : i32
    %4 = vector.broadcast %c0_i32 : i32 to vector<32x1xi32>
    %5 = arith.cmpi eq, %3, %4 : vector<32x1xi32>
    %c15_i32 = arith.constant 15 : i32
    %6 = vector.broadcast %c15_i32 : i32 to vector<32x1xi32>
    %7 = arith.cmpi eq, %3, %6 : vector<32x1xi32>
    %c16_i32 = arith.constant 16 : i32
    %8 = vector.broadcast %c16_i32 : i32 to vector<32x1xi32>
    %9 = arith.cmpi eq, %3, %8 : vector<32x1xi32>
    %10 = arith.ori %5, %9 : vector<32x1xi1>
    %c31_i32 = arith.constant 31 : i32
    %11 = vector.broadcast %c31_i32 : i32 to vector<32x1xi32>
    %12 = arith.cmpi eq, %3, %11 : vector<32x1xi32>
    %13 = arith.ori %7, %12 : vector<32x1xi1>
    %cst = arith.constant 0.000000e+00 : f32
    %cst_2 = arith.constant 1.000000e+00 : f32
    %14 = vector.broadcast %cst : f32 to vector<32x1xf32>
    %15 = vector.broadcast %cst_2 : f32 to vector<32x1xf32>
    %16 = arith.select %10, %14, %15 : vector<32x1xi1>, vector<32x1xf32>
    %cst_3 = arith.constant 0.000000e+00 : f32
    %cst_4 = arith.constant 1.000000e+00 : f32
    %17 = vector.broadcast %cst_3 : f32 to vector<32x1xf32>
    %18 = vector.broadcast %cst_4 : f32 to vector<32x1xf32>
    %19 = arith.select %13, %17, %18 : vector<32x1xi1>, vector<32x1xf32>
    %cst_5 = arith.constant 0.000000e+00 : f32
    %20 = vector.broadcast %cst_5 : f32 to vector<1x128xf32>
    %cst_6 = arith.constant 0.000000e+00 : f32
    %21 = vector.broadcast %cst_6 : f32 to vector<32x64xf32>
    %22 = arith.cmpf oge, %2, %21 : vector<32x64xf32>
    %23 = vector.broadcast %0 : f32 to vector<32x64xf32>
    %24 = arith.mulf %23, %2 : vector<32x64xf32>
    %25 = arith.select %22, %2, %24 : vector<32x64xi1>, vector<32x64xf32>
    %c0_7 = arith.constant 0 : index
    %c0_8 = arith.constant 0 : index
    %c0_9 = arith.constant 0 : index
    %26 = vector.load %arg3[%c0_7, %c0_8, %c0_9] : memref<3x64x128xf32, #tpu.memory_space<vmem>>, vector<1x64x128xf32>
    %27 = vector.shape_cast %26 : vector<1x64x128xf32> to vector<64x128xf32>
    %cst_10 = arith.constant dense<0.000000e+00> : vector<32x128xf32>
    %28 = tpu.matmul %25, %27, %cst_10 {dimension_numbers = #tpu.dot_dimension_numbers<[1], [0], [0], [1], [0, 0, 1, 1], [], []>} : vector<32x64xf32>, vector<64x128xf32>, vector<32x128xf32> -> vector<32x128xf32>
    %c1_11 = arith.constant 1 : index
    %c0_12 = arith.constant 0 : index
    %c0_13 = arith.constant 0 : index
    %29 = vector.load %arg3[%c1_11, %c0_12, %c0_13] : memref<3x64x128xf32, #tpu.memory_space<vmem>>, vector<1x64x128xf32>
    %30 = vector.shape_cast %29 : vector<1x64x128xf32> to vector<64x128xf32>
    %cst_14 = arith.constant dense<0.000000e+00> : vector<32x128xf32>
    %31 = tpu.matmul %25, %30, %cst_14 {dimension_numbers = #tpu.dot_dimension_numbers<[1], [0], [0], [1], [0, 0, 1, 1], [], []>} : vector<32x64xf32>, vector<64x128xf32>, vector<32x128xf32> -> vector<32x128xf32>
    %c2 = arith.constant 2 : index
    %c0_15 = arith.constant 0 : index
    %c0_16 = arith.constant 0 : index
    %32 = vector.load %arg3[%c2, %c0_15, %c0_16] : memref<3x64x128xf32, #tpu.memory_space<vmem>>, vector<1x64x128xf32>
    %33 = vector.shape_cast %32 : vector<1x64x128xf32> to vector<64x128xf32>
    %cst_17 = arith.constant dense<0.000000e+00> : vector<32x128xf32>
    %34 = tpu.matmul %25, %33, %cst_17 {dimension_numbers = #tpu.dot_dimension_numbers<[1], [0], [0], [1], [0, 0, 1, 1], [], []>} : vector<32x64xf32>, vector<64x128xf32>, vector<32x128xf32> -> vector<32x128xf32>
    %35 = vector.extract_strided_slice %28 {offsets = [0, 0], sizes = [31, 128], strides = [1, 1]} : vector<32x128xf32> to vector<31x128xf32>
    %36 = tpu.concatenate %20, %35 in 0 : vector<1x128xf32>, vector<31x128xf32> -> vector<32x128xf32>
    %37 = vector.broadcast %16 : vector<32x1xf32> to vector<32x128xf32>
    %38 = arith.mulf %36, %37 : vector<32x128xf32>
    %39 = vector.extract_strided_slice %34 {offsets = [1, 0], sizes = [31, 128], strides = [1, 1]} : vector<32x128xf32> to vector<31x128xf32>
    %40 = tpu.concatenate %39, %20 in 0 : vector<31x128xf32>, vector<1x128xf32> -> vector<32x128xf32>
    %41 = vector.broadcast %19 : vector<32x1xf32> to vector<32x128xf32>
    %42 = arith.mulf %40, %41 : vector<32x128xf32>
    %43 = arith.addf %31, %38 : vector<32x128xf32>
    %44 = arith.addf %43, %42 : vector<32x128xf32>
    %c0_18 = arith.constant 0 : index
    %c0_19 = arith.constant 0 : index
    %45 = vector.load %arg4[%c0_18, %c0_19] : memref<1x128xf32, #tpu.memory_space<vmem>>, vector<1x128xf32>
    %46 = vector.broadcast %45 : vector<1x128xf32> to vector<32x128xf32>
    %47 = arith.addf %44, %46 : vector<32x128xf32>
    %cst_20 = arith.constant 0.000000e+00 : f32
    %48 = vector.broadcast %cst_20 : f32 to vector<32x128xf32>
    %49 = arith.cmpf oge, %47, %48 : vector<32x128xf32>
    %50 = vector.broadcast %1 : f32 to vector<32x128xf32>
    %51 = arith.mulf %50, %47 : vector<32x128xf32>
    %52 = arith.select %49, %47, %51 : vector<32x128xi1>, vector<32x128xf32>
    %c0_21 = arith.constant 0 : index
    %c0_22 = arith.constant 0 : index
    %c0_23 = arith.constant 0 : index
    %53 = vector.load %arg5[%c0_21, %c0_22, %c0_23] : memref<3x128x128xf32, #tpu.memory_space<vmem>>, vector<1x128x128xf32>
    %54 = vector.shape_cast %53 : vector<1x128x128xf32> to vector<128x128xf32>
    %cst_24 = arith.constant dense<0.000000e+00> : vector<32x128xf32>
    %55 = tpu.matmul %52, %54, %cst_24 {dimension_numbers = #tpu.dot_dimension_numbers<[1], [0], [0], [1], [0, 0, 1, 1], [], []>} : vector<32x128xf32>, vector<128x128xf32>, vector<32x128xf32> -> vector<32x128xf32>
    %c1_25 = arith.constant 1 : index
    %c0_26 = arith.constant 0 : index
    %c0_27 = arith.constant 0 : index
    %56 = vector.load %arg5[%c1_25, %c0_26, %c0_27] : memref<3x128x128xf32, #tpu.memory_space<vmem>>, vector<1x128x128xf32>
    %57 = vector.shape_cast %56 : vector<1x128x128xf32> to vector<128x128xf32>
    %cst_28 = arith.constant dense<0.000000e+00> : vector<32x128xf32>
    %58 = tpu.matmul %52, %57, %cst_28 {dimension_numbers = #tpu.dot_dimension_numbers<[1], [0], [0], [1], [0, 0, 1, 1], [], []>} : vector<32x128xf32>, vector<128x128xf32>, vector<32x128xf32> -> vector<32x128xf32>
    %c2_29 = arith.constant 2 : index
    %c0_30 = arith.constant 0 : index
    %c0_31 = arith.constant 0 : index
    %59 = vector.load %arg5[%c2_29, %c0_30, %c0_31] : memref<3x128x128xf32, #tpu.memory_space<vmem>>, vector<1x128x128xf32>
    %60 = vector.shape_cast %59 : vector<1x128x128xf32> to vector<128x128xf32>
    %cst_32 = arith.constant dense<0.000000e+00> : vector<32x128xf32>
    %61 = tpu.matmul %52, %60, %cst_32 {dimension_numbers = #tpu.dot_dimension_numbers<[1], [0], [0], [1], [0, 0, 1, 1], [], []>} : vector<32x128xf32>, vector<128x128xf32>, vector<32x128xf32> -> vector<32x128xf32>
    %62 = vector.extract_strided_slice %55 {offsets = [0, 0], sizes = [31, 128], strides = [1, 1]} : vector<32x128xf32> to vector<31x128xf32>
    %63 = tpu.concatenate %20, %62 in 0 : vector<1x128xf32>, vector<31x128xf32> -> vector<32x128xf32>
    %64 = vector.broadcast %16 : vector<32x1xf32> to vector<32x128xf32>
    %65 = arith.mulf %63, %64 : vector<32x128xf32>
    %66 = vector.extract_strided_slice %61 {offsets = [1, 0], sizes = [31, 128], strides = [1, 1]} : vector<32x128xf32> to vector<31x128xf32>
    %67 = tpu.concatenate %66, %20 in 0 : vector<31x128xf32>, vector<1x128xf32> -> vector<32x128xf32>
    %68 = vector.broadcast %19 : vector<32x1xf32> to vector<32x128xf32>
    %69 = arith.mulf %67, %68 : vector<32x128xf32>
    %70 = arith.addf %58, %65 : vector<32x128xf32>
    %71 = arith.addf %70, %69 : vector<32x128xf32>
    %c0_33 = arith.constant 0 : index
    %c0_34 = arith.constant 0 : index
    %72 = vector.load %arg6[%c0_33, %c0_34] : memref<1x128xf32, #tpu.memory_space<vmem>>, vector<1x128xf32>
    %73 = vector.broadcast %72 : vector<1x128xf32> to vector<32x128xf32>
    %74 = arith.addf %71, %73 : vector<32x128xf32>
    %c0_35 = arith.constant 0 : index
    %c0_36 = arith.constant 0 : index
    %c0_37 = arith.constant 0 : index
    %75 = vector.load %arg7[%c0_35, %c0_36, %c0_37] : memref<3x64x128xf32, #tpu.memory_space<vmem>>, vector<1x64x128xf32>
    %76 = vector.shape_cast %75 : vector<1x64x128xf32> to vector<64x128xf32>
    %cst_38 = arith.constant dense<0.000000e+00> : vector<32x128xf32>
    %77 = tpu.matmul %2, %76, %cst_38 {dimension_numbers = #tpu.dot_dimension_numbers<[1], [0], [0], [1], [0, 0, 1, 1], [], []>} : vector<32x64xf32>, vector<64x128xf32>, vector<32x128xf32> -> vector<32x128xf32>
    %c1_39 = arith.constant 1 : index
    %c0_40 = arith.constant 0 : index
    %c0_41 = arith.constant 0 : index
    %78 = vector.load %arg7[%c1_39, %c0_40, %c0_41] : memref<3x64x128xf32, #tpu.memory_space<vmem>>, vector<1x64x128xf32>
    %79 = vector.shape_cast %78 : vector<1x64x128xf32> to vector<64x128xf32>
    %cst_42 = arith.constant dense<0.000000e+00> : vector<32x128xf32>
    %80 = tpu.matmul %2, %79, %cst_42 {dimension_numbers = #tpu.dot_dimension_numbers<[1], [0], [0], [1], [0, 0, 1, 1], [], []>} : vector<32x64xf32>, vector<64x128xf32>, vector<32x128xf32> -> vector<32x128xf32>
    %c2_43 = arith.constant 2 : index
    %c0_44 = arith.constant 0 : index
    %c0_45 = arith.constant 0 : index
    %81 = vector.load %arg7[%c2_43, %c0_44, %c0_45] : memref<3x64x128xf32, #tpu.memory_space<vmem>>, vector<1x64x128xf32>
    %82 = vector.shape_cast %81 : vector<1x64x128xf32> to vector<64x128xf32>
    %cst_46 = arith.constant dense<0.000000e+00> : vector<32x128xf32>
    %83 = tpu.matmul %2, %82, %cst_46 {dimension_numbers = #tpu.dot_dimension_numbers<[1], [0], [0], [1], [0, 0, 1, 1], [], []>} : vector<32x64xf32>, vector<64x128xf32>, vector<32x128xf32> -> vector<32x128xf32>
    %84 = vector.extract_strided_slice %77 {offsets = [0, 0], sizes = [31, 128], strides = [1, 1]} : vector<32x128xf32> to vector<31x128xf32>
    %85 = tpu.concatenate %20, %84 in 0 : vector<1x128xf32>, vector<31x128xf32> -> vector<32x128xf32>
    %86 = vector.broadcast %16 : vector<32x1xf32> to vector<32x128xf32>
    %87 = arith.mulf %85, %86 : vector<32x128xf32>
    %88 = vector.extract_strided_slice %83 {offsets = [1, 0], sizes = [31, 128], strides = [1, 1]} : vector<32x128xf32> to vector<31x128xf32>
    %89 = tpu.concatenate %88, %20 in 0 : vector<31x128xf32>, vector<1x128xf32> -> vector<32x128xf32>
    %90 = vector.broadcast %19 : vector<32x1xf32> to vector<32x128xf32>
    %91 = arith.mulf %89, %90 : vector<32x128xf32>
    %92 = arith.addf %80, %87 : vector<32x128xf32>
    %93 = arith.addf %92, %91 : vector<32x128xf32>
    %c0_47 = arith.constant 0 : index
    %c0_48 = arith.constant 0 : index
    %94 = vector.load %arg8[%c0_47, %c0_48] : memref<1x128xf32, #tpu.memory_space<vmem>>, vector<1x128xf32>
    %95 = vector.broadcast %94 : vector<1x128xf32> to vector<32x128xf32>
    %96 = arith.addf %93, %95 : vector<32x128xf32>
    %97 = arith.addf %74, %96 : vector<32x128xf32>
    %c0_49 = arith.constant 0 : index
    %c0_50 = arith.constant 0 : index
    %98 = vector.load %arg9[%c0_49, %c0_50] : memref<32x128xf32, #tpu.memory_space<vmem>>, vector<32x128xf32>
    tpu.vector_store %arg9[%c0_49, %c0_50], %97 {strides = array<i32>} : memref<32x128xf32, #tpu.memory_space<vmem>>, vector<32x128xf32>,
    return
  }
  func.func @transform_0(%arg0: i32) -> i32 {
    %c0_i32 = arith.constant 0 : i32
    %c0_i32_0 = arith.constant 0 : i32
    return %c0_i32 : i32
  }
  func.func @transform_1(%arg0: i32) -> (i32, i32) {
    %c0_i32 = arith.constant 0 : i32
    %c0_i32_0 = arith.constant 0 : i32
    return %arg0, %c0_i32 : i32, i32
  }
  func.func @transform_2(%arg0: i32) -> (i32, i32, i32) {
    %c0_i32 = arith.constant 0 : i32
    %c0_i32_0 = arith.constant 0 : i32
    %c0_i32_1 = arith.constant 0 : i32
    %c0_i32_2 = arith.constant 0 : i32
    return %c0_i32, %c0_i32_0, %c0_i32_1 : i32, i32, i32
  }
  func.func @transform_3(%arg0: i32) -> (i32, i32) {
    %c0_i32 = arith.constant 0 : i32
    %c0_i32_0 = arith.constant 0 : i32
    %c0_i32_1 = arith.constant 0 : i32
    return %c0_i32, %c0_i32_0 : i32, i32
  }
  func.func @transform_4(%arg0: i32) -> (i32, i32, i32) {
    %c0_i32 = arith.constant 0 : i32
    %c0_i32_0 = arith.constant 0 : i32
    %c0_i32_1 = arith.constant 0 : i32
    %c0_i32_2 = arith.constant 0 : i32
    return %c0_i32, %c0_i32_0, %c0_i32_1 : i32, i32, i32
  }
  func.func @transform_5(%arg0: i32) -> (i32, i32) {
    %c0_i32 = arith.constant 0 : i32
    %c0_i32_0 = arith.constant 0 : i32
    %c0_i32_1 = arith.constant 0 : i32
    return %c0_i32, %c0_i32_0 : i32, i32
  }
  func.func @transform_6(%arg0: i32) -> (i32, i32, i32) {
    %c0_i32 = arith.constant 0 : i32
    %c0_i32_0 = arith.constant 0 : i32
    %c0_i32_1 = arith.constant 0 : i32
    %c0_i32_2 = arith.constant 0 : i32
    return %c0_i32, %c0_i32_0, %c0_i32_1 : i32, i32, i32
  }
  func.func @transform_7(%arg0: i32) -> (i32, i32) {
    %c0_i32 = arith.constant 0 : i32
    %c0_i32_0 = arith.constant 0 : i32
    %c0_i32_1 = arith.constant 0 : i32
    return %c0_i32, %c0_i32_0 : i32, i32
  }
  func.func @transform_8(%arg0: i32) -> (i32, i32) {
    %c0_i32 = arith.constant 0 : i32
    %c0_i32_0 = arith.constant 0 : i32
    return %arg0, %c0_i32 : i32, i32
  }
}

</mosaic_0001>

<bundles_post_ra>
// kernel: tpu_custom_call.1
= control target key start
LH: loop header
LB: loop body
LE: loop exit
PB: predicated region body
PF: predicated region fallthrough
CT: control target
= control target key end

     0   :  { %13 = vsyncpa [#allocation5], 0  ;;  %s2290_s0 = inlined_call_operand.hbm [shape: f32[2], index: 0, kind: input, shape index: {}]   ;;  %s2291_s1 = inlined_call_operand.hbm [shape: f32[32,64], index: 1, kind: input, shape index: {}]   ;;  %s2292_s2 = inlined_call_operand.hbm [shape: f32[3,64,128], index: 2, kind: input, shape index: {}]   ;;  %s2293_s3 = inlined_call_operand.vmem [shape: f32[1,128], index: 3, kind: input, shape index: {}]   ;;  %s2294_s4 = inlined_call_operand.hbm [shape: f32[3,128,128], index: 4, kind: input, shape index: {}]   ;;  %s2295_s5 = inlined_call_operand.vmem [shape: f32[1,128], index: 5, kind: input, shape index: {}]   ;;  %s2296_s6 = inlined_call_operand.hbm [shape: f32[3,64,128], index: 6, kind: input, shape index: {}]   ;;  %s2297_s7 = inlined_call_operand.vmem [shape: f32[1,128], index: 7, kind: input, shape index: {}]   ;;  %s2298_s8 = inlined_call_operand.hbm [shape: f32[32,128], index: 8, kind: output, shape index: {}]  }
   0x1   :  { %14 = vsyncpa [#allocation3], 0 }
   0x2   :  { %15 = vsyncpa [#allocation8], 0 }
   0x3   :  { %16 = vsyncpa [#allocation11], 0 }
   0x4   :  { %17 = vsyncpa [#allocation4], 0  ;;  %s2017_s27 = smov [#allocation7]   ;;  %s2018_s29 = smov [#allocation6]  }
   0x5   :  { %s43_s28 = sshll.u32 %s2017_s27, 4  ;;  %s31_s30 = sshll.u32 %s2018_s29, 4  ;;  %s44_s28 = int_to_ptr.vmem [resolvable:$true] %s43_s28  ;;  %s32_s30 = int_to_ptr.vmem [resolvable:$true] %s31_s30 }
   0x6   :  { %s1887_s11 = scalar_lea.hbm %s2292_s2, 3072 }
   0x7   :  { %p1888_p0 = scmp.ne.s32.totalorder %s2292_s2, %s1887_s11  ;;  %p1891_p1 = scmp.lt.u32.totalorder %s1887_s11, %s2292_s2 }
   0x9   :  { %p1893_p2 = pnand %p1891_p1, %p1888_p0 }
   0xb   :  { %1896 = shalt.err (!%p1893_p2)
}
   0xc   :  { %s1897_s16 = scalar_lea.vmem %s44_s28, 3072  ;;  %p1902_p4 = scmp.lt.s32.totalorder %s44_s28, %s44_s28 }
   0xd   :  { %p1898_p3 = scmp.ne.s32.totalorder %s44_s28, %s1897_s16  ;;  %p1903_p5 = scmp.lt.s32.totalorder %s1897_s16, %s1897_s16 }
   0xf   :  { %p1904_p6 = por %p1903_p5, %p1902_p4 }
  0x11   :  { %p1905_p7 = pnand %p1904_p6, %p1898_p3 }
  0x13   :  { %1908 = shalt.err (!%p1905_p7)
}
  0x14   :  { %s2019_s17 = smov 128   ;;  %s2020_s18 = smov 8  }
  0x15   :  { %49 = dma.hbm_to_vmem [thread:$0]  %s2292_s2, 3072, %s44_s28, [#allocation8], %s2019_s17, %s2019_s17, %s2020_s18  }
  0x16   :  { %s1909_s23 = scalar_lea.hbm %s2290_s0, 16 }
  0x17   :  { %p1910_p8 = scmp.ne.s32.totalorder %s2290_s0, %s1909_s23  ;;  %p1913_p9 = scmp.lt.u32.totalorder %s1909_s23, %s2290_s0 }
  0x19   :  { %p1915_p10 = pnand %p1913_p9, %p1910_p8 }
  0x1b   :  { %1918 = shalt.err (!%p1915_p10)
}
  0x1c   :  { %s2021_s29 = smov [#allocation2]   ;;  %s1919_s11 = scalar_lea.hbm %s2291_s1, 512 }
  0x1d   :  { %25 = dma.hbm_to_smem %s2290_s0, 16, %s2021_s29, [#allocation5]  }
  0x1e   :  { %p1920_p11 = scmp.ne.s32.totalorder %s2291_s1, %s1919_s11  ;;  %p1923_p12 = scmp.lt.u32.totalorder %s1919_s11, %s2291_s1 }
  0x20   :  { %p1925_p13 = pnand %p1923_p12, %p1920_p11 }
  0x22   :  { %1928 = shalt.err (!%p1925_p13)
}
  0x23   :  { %s1929_s16 = scalar_lea.vmem %s32_s30, 512  ;;  %p1934_p1 = scmp.lt.s32.totalorder %s32_s30, %s32_s30 }
  0x24   :  { %p1930_p0 = scmp.ne.s32.totalorder %s32_s30, %s1929_s16  ;;  %p1935_p2 = scmp.lt.s32.totalorder %s1929_s16, %s1929_s16 }
  0x26   :  { %p1936_p3 = por %p1935_p2, %p1934_p1 }
  0x28   :  { %p1937_p4 = pnand %p1936_p3, %p1930_p0 }
  0x2a   :  { %1940 = shalt.err (!%p1937_p4)
}
  0x2b   :  { %37 = dma.hbm_to_vmem [thread:$0]  %s2291_s1, 512, %s32_s30, [#allocation3], %s2019_s17, %s2019_s17, %s2020_s18  }
  0x2c   :  { %s2022_s20 = smov [#allocation9]   ;;  %s2023_s22 = smov [#allocation10]  }
  0x2d   :  { %s57_s21 = sshll.u32 %s2022_s20, 4  ;;  %s71_s23 = sshll.u32 %s2023_s22, 4  ;;  %s58_s21 = int_to_ptr.vmem [resolvable:$true] %s57_s21  ;;  %s72_s23 = int_to_ptr.vmem [resolvable:$true] %s71_s23 }
  0x2e   :  { %s1941_s26 = scalar_lea.hbm %s2294_s4, 6144 }
  0x2f   :  { %p1942_p5 = scmp.ne.s32.totalorder %s2294_s4, %s1941_s26  ;;  %p1945_p6 = scmp.lt.u32.totalorder %s1941_s26, %s2294_s4 }
  0x31   :  { %p1947_p7 = pnand %p1945_p6, %p1942_p5 }
  0x33   :  { %1950 = shalt.err (!%p1947_p7)
}
  0x34   :  { %s1951_s1 = scalar_lea.vmem %s58_s21, 6144  ;;  %p1956_p9 = scmp.lt.s32.totalorder %s58_s21, %s58_s21 }
  0x35   :  { %p1952_p8 = scmp.ne.s32.totalorder %s58_s21, %s1951_s1  ;;  %p1957_p10 = scmp.lt.s32.totalorder %s1951_s1, %s1951_s1 }
  0x37   :  { %p1958_p11 = por %p1957_p10, %p1956_p9 }
  0x39   :  { %p1959_p12 = pnand %p1958_p11, %p1952_p8 }
  0x3b   :  { %1962 = shalt.err (!%p1959_p12)
}
  0x3c   :  { %63 = dma.hbm_to_vmem [thread:$0]  %s2294_s4, 6144, %s58_s21, [#allocation8], %s2019_s17, %s2019_s17, %s2020_s18  }
  0x3d   :  { %s1963_s12 = scalar_lea.hbm %s2296_s6, 3072 }
  0x3e   :  { %p1964_p13 = scmp.ne.s32.totalorder %s2296_s6, %s1963_s12  ;;  %p1967_p0 = scmp.lt.u32.totalorder %s1963_s12, %s2296_s6 }
  0x40   :  { %p1969_p1 = pnand %p1967_p0, %p1964_p13 }
  0x42   :  { %1972 = shalt.err (!%p1969_p1)
}
  0x43   :  { %s1973_s0 = scalar_lea.vmem %s72_s23, 3072  ;;  %p1978_p3 = scmp.lt.s32.totalorder %s72_s23, %s72_s23 }
  0x44   :  { %p1974_p2 = scmp.ne.s32.totalorder %s72_s23, %s1973_s0  ;;  %p1979_p4 = scmp.lt.s32.totalorder %s1973_s0, %s1973_s0 }
  0x46   :  { %p1980_p5 = por %p1979_p4, %p1978_p3 }
  0x48   :  { %p1981_p6 = pnand %p1980_p5, %p1974_p2 }
  0x4a   :  { %1984 = shalt.err (!%p1981_p6)
}
  0x4b   :  { %77 = dma.hbm_to_vmem [thread:$0]  %s2296_s6, 3072, %s72_s23, [#allocation11], %s2019_s17, %s2019_s17, %s2020_s18  }
  0x4c   :  { %2007 = dma.done.wait [#allocation5], 16  }
  0x4d   :  { %2008 = vsyncadd [#allocation5], 4294967280 }
  0x4e   :  { %2009 = dma.done.wait [#allocation3], 512  }
  0x4f   :  { %2010 = vsyncadd [#allocation3], 4294966784 }
  0x50   :  { %2011 = dma.done.wait [#allocation8], 9216  }
  0x51   :  { %2012 = vsyncadd [#allocation8], 4294958080 }
  0x52   :  { %2013 = dma.done.wait [#allocation11], 3072  }
  0x53   :  { %2014 = vsyncadd [#allocation11], 4294964224 }
  0x54   :  { %95 = sfence }
  0x55   :  { %v152_v0 = vld [vmem:[#allocation7] sm:$0xff]  ;;  %v153_v1 = vld [vmem:[#allocation7 + $0x8] sm:$0xff]  ;;  %v154_v2 = vld [vmem:[#allocation7 + $0x10] sm:$0xff]  ;;  %s96_s20 = sld [smem:[#allocation2]]  ;;  %vm160_vm1 = vcmask 523264   ;;  %vm365_vm5 = vcmask 1040384  }
  0x56   :  { %v1658_v3 = vpack.c.bf16 %v153_v1, %v152_v0  ;;  %v155_v4 = vld [vmem:[#allocation7 + $0x18] sm:$0xff]  ;;  %v268_v5 = vld [vmem:[#allocation7 + $0x80] sm:$0xff]  ;;  %v269_v6 = vld [vmem:[#allocation7 + $0x88] sm:$0xff]  ;;  %vm386_vm6 = vcmask 1046528   ;;  %s1252_s6 = sld [smem:[#allocation2 + $0x1]]  ;;  %s2025_s25 = smov [#allocation12]  }
  0x57   :  { %v1662_v7 = vpack.c.bf16 %v155_v4, %v154_v2  ;;  %v1674_v8 = vpack.c.bf16 %v269_v6, %v268_v5  ;;  %v156_v9 = vld [vmem:[#allocation7 + $0x20] sm:$0xff]  ;;  %v157_v10 = vld [vmem:[#allocation7 + $0x28] sm:$0xff]  ;;  %v270_v11 = vld [vmem:[#allocation7 + $0x90] sm:$0xff]  ;;  %s1237_s26 = sshll.u32 %s2025_s25, 4  ;;  %s1238_s26 = int_to_ptr.vmem [resolvable:$true] %s1237_s26 }
  0x58   :  { %1659 = vmatprep.subr.bf16.mxu0 %v1658_v3  ;;  %v271_v12 = vld [vmem:[#allocation7 + $0x98] sm:$0xff]  ;;  %v272_v14 = vld [vmem:[#allocation7 + $0xa0] sm:$0xff]  ;;  %v273_v15 = vld [vmem:[#allocation7 + $0xa8] sm:$0xff]  ;;  %v1666_v17 = vpack.c.bf16 %v157_v10, %v156_v9  ;;  %s1985_s27 = scalar_lea.vmem %s1238_s26, 512  ;;  %p1990_p8 = scmp.lt.s32.totalorder %s1238_s26, %s1238_s26 }
  0x59   :  { %1661 = vmatpush3.bf16.msra.mxu0 %v1658_v3  ;;  %1675 = vmatprep.subr.bf16.mxu1 %v1674_v8  ;;  %v1678_v13 = vpack.c.bf16 %v271_v12, %v270_v11  ;;  %v2143_v16 = vld [vmem:[#allocation6] sm:$0xff]  ;;  %v158_v18 = vld [vmem:[#allocation7 + $0x30] sm:$0xff]  ;;  %v159_v19 = vld [vmem:[#allocation7 + $0x38] sm:$0xff]  ;;  %v1682_v20 = vpack.c.bf16 %v273_v15, %v272_v14  ;;  %p1986_p7 = scmp.ne.s32.totalorder %s1238_s26, %s1985_s27  ;;  %p1991_p9 = scmp.lt.s32.totalorder %s1985_s27, %s1985_s27 }
  0x5a   :  { %1663 = vmatprep.subr.bf16.mxu0 %v1662_v7  ;;  %1677 = vmatpush3.bf16.msra.mxu1 %v1674_v8  ;;  %vm139_vm0 = vcmp.ge.f32.partialorder %v2143_v16, 0.0  ;;  %v274_v23 = vld [vmem:[#allocation7 + $0xb0] sm:$0xff]  ;;  %v275_v24 = vld [vmem:[#allocation7 + $0xb8] sm:$0xff]  ;;  %v1670_v25 = vpack.c.bf16 %v159_v19, %v158_v18  ;;  %v2148_v27 = vld [vmem:[#allocation6 + $0x8] sm:$0xff] }
  0x5b   :  { %1679 = vmatprep.subr.bf16.mxu1 %v1678_v13  ;;  %v143_v21 = vstv %s96_s20  ;;  %v259_v28 = vld [vmem:[#allocation7 + $0x40] sm:$0xff]  ;;  %v260_v29 = vld [vmem:[#allocation7 + $0x48] sm:$0xff]  ;;  %v1686_v30 = vpack.c.bf16 %v275_v24, %v274_v23  ;;  %v2151_v31 = vld [vmem:[#allocation6 + $0x10] sm:$0xff]  ;;  %vm140_vm2 = vcmp.ge.f32.partialorder %v2148_v27, 0.0  ;;  %p1992_p10 = por %p1991_p9, %p1990_p8 }
  0x5c   :  { %v144_v22 = vmul.f32 %v143_v21, %v2143_v16  ;;  %v516_v32 = vld [vmem:[#allocation9] sm:$0xff]  ;;  %v517_v33 = vld [vmem:[#allocation9 + $0x8] sm:$0xff]  ;;  %v145_v34 = vmul.f32 %v143_v21, %v2148_v27  ;;  %v1690_v35 = vpack.c.bf16 %v260_v29, %v259_v28  ;;  %v146_v36 = vmul.f32 %v143_v21, %v2151_v31  ;;  %v2157_v37 = vld [vmem:[#allocation6 + $0x18] sm:$0xff] }
  0x5d   :  { %1665 = vmatpush3.bf16.msra.mxu0 %v1662_v7  ;;  %vm141_vm3 = vcmp.ge.f32.partialorder %v2151_v31, 0.0  ;;  %v261_v38 = vld [vmem:[#allocation7 + $0x50] sm:$0xff]  ;;  %v262_v39 = vld [vmem:[#allocation7 + $0x58] sm:$0xff]  ;;  %v1706_v40 = vpack.c.bf16 %v517_v33, %v516_v32  ;;  %v147_v42 = vmul.f32 %v143_v21, %v2157_v37  ;;  %vm142_vm4 = vcmp.ge.f32.partialorder %v2157_v37, 0.0  ;;  %v263_v47 = vld [vmem:[#allocation7 + $0x60] sm:$0xff]  ;;  %p1993_p11 = pnand %p1992_p10, %p1986_p7 }
  0x5e   :  { %1667 = vmatprep.subr.bf16.mxu0 %v1666_v17  ;;  %1681 = vmatpush3.bf16.msra.mxu1 %v1678_v13  ;;  %v148_v26 = vsel %vm139_vm0, %v2143_v16, %v144_v22  ;;  %v149_v41 = vsel %vm140_vm2, %v2148_v27, %v145_v34  ;;  %v518_v43 = vld [vmem:[#allocation9 + $0x10] sm:$0xff]  ;;  %v519_v44 = vld [vmem:[#allocation9 + $0x18] sm:$0xff]  ;;  %v150_v45 = vsel %vm141_vm3, %v2151_v31, %v146_v36  ;;  %v264_v48 = vld [vmem:[#allocation7 + $0x68] sm:$0xff] }
  0x5f   :  { %1683 = vmatprep.subr.bf16.mxu1 %v1682_v20  ;;  %1428 = vmatprep.mubr.msk.f32.mxu0 %vm160_vm1, %v148_v26  ;;  %v1694_v46 = vpack.c.bf16 %v262_v39, %v261_v38  ;;  %v1710_v49 = vpack.c.bf16 %v519_v44, %v518_v43  ;;  %v151_v50 = vsel %vm142_vm4, %v2157_v37, %v147_v42  ;;  %v265_v52 = vld [vmem:[#allocation7 + $0x70] sm:$0xff]  ;;  %v266_v53 = vld [vmem:[#allocation7 + $0x78] sm:$0xff]  ;;  %v635_v55 = vld [vmem:[#allocation9 + $0x100] sm:$0xff] }
  0x60   :  { %1450 = vmatprep.mubr.msk.f32.mxu1 %vm160_vm1, %v148_v26  ;;  %v1698_v51 = vpack.c.bf16 %v264_v48, %v263_v47  ;;  %v1702_v54 = vpack.c.bf16 %v266_v53, %v265_v52  ;;  %v636_v56 = vld [vmem:[#allocation9 + $0x108] sm:$0xff]  ;;  %v637_v58 = vld [vmem:[#allocation9 + $0x110] sm:$0xff]  ;;  %v638_v59 = vld [vmem:[#allocation9 + $0x118] sm:$0xff] }
  0x61   :  { %1669 = vmatpush3.bf16.msra.mxu0 %v1666_v17  ;;  %v1738_v57 = vpack.c.bf16 %v636_v56, %v635_v55  ;;  %v1742_v60 = vpack.c.bf16 %v638_v59, %v637_v58  ;;  %v520_v61 = vld [vmem:[#allocation9 + $0x20] sm:$0xff]  ;;  %v521_v62 = vld [vmem:[#allocation9 + $0x28] sm:$0xff]  ;;  %v522_v3 = vld [vmem:[#allocation9 + $0x30] sm:$0xff] }
  0x62   :  { %1671 = vmatprep.subr.bf16.mxu0 %v1670_v25  ;;  %1685 = vmatpush3.bf16.msra.mxu1 %v1682_v20  ;;  %v639_v63 = vld [vmem:[#allocation9 + $0x120] sm:$0xff]  ;;  %v1714_v0 = vpack.c.bf16 %v521_v62, %v520_v61  ;;  %v640_v1 = vld [vmem:[#allocation9 + $0x128] sm:$0xff]  ;;  %v523_v4 = vld [vmem:[#allocation9 + $0x38] sm:$0xff] }
  0x63   :  { %1687 = vmatprep.subr.bf16.mxu1 %v1686_v30  ;;  %v1746_v2 = vpack.c.bf16 %v640_v1, %v639_v63  ;;  %v641_v5 = vld [vmem:[#allocation9 + $0x130] sm:$0xff]  ;;  %v1718_v6 = vpack.c.bf16 %v523_v4, %v522_v3  ;;  %v642_v7 = vld [vmem:[#allocation9 + $0x138] sm:$0xff]  ;;  %v524_v9 = vld [vmem:[#allocation9 + $0x40] sm:$0xff] }
  0x64   :  { %v1750_v8 = vpack.c.bf16 %v642_v7, %v641_v5  ;;  %v525_v10 = vld [vmem:[#allocation9 + $0x48] sm:$0xff]  ;;  %v643_v11 = vld [vmem:[#allocation9 + $0x140] sm:$0xff]  ;;  %v526_v15 = vld [vmem:[#allocation9 + $0x50] sm:$0xff]  ;;  %v2024_v7 = vmov 1.0  }
  0x65   :  { %1673 = vmatpush3.bf16.msra.mxu0 %v1670_v25  ;;  %v1722_v12 = vpack.c.bf16 %v525_v10, %v524_v9  ;;  %v644_v13 = vld [vmem:[#allocation9 + $0x148] sm:$0xff]  ;;  %v527_v17 = vld [vmem:[#allocation9 + $0x58] sm:$0xff]  ;;  %v645_v18 = vld [vmem:[#allocation9 + $0x150] sm:$0xff] }
  0x66   :  { %1691 = vmatprep.subr.bf16.mxu0 %v1690_v35  ;;  %1689 = vmatpush3.bf16.msra.mxu1 %v1686_v30  ;;  %v1754_v14 = vpack.c.bf16 %v644_v13, %v643_v11  ;;  %v1726_v19 = vpack.c.bf16 %v527_v17, %v526_v15  ;;  %v646_v20 = vld [vmem:[#allocation9 + $0x158] sm:$0xff]  ;;  %v528_v22 = vld [vmem:[#allocation9 + $0x60] sm:$0xff]  ;;  %v529_v23 = vld [vmem:[#allocation9 + $0x68] sm:$0xff] }
  0x67   :  { %1707 = vmatprep.subr.bf16.mxu1 %v1706_v40  ;;  %v1758_v21 = vpack.c.bf16 %v646_v20, %v645_v18  ;;  %v647_v24 = vld [vmem:[#allocation9 + $0x160] sm:$0xff]  ;;  %v1730_v25 = vpack.c.bf16 %v529_v23, %v528_v22  ;;  %v530_v29 = vld [vmem:[#allocation9 + $0x70] sm:$0xff]  ;;  %v531_v30 = vld [vmem:[#allocation9 + $0x78] sm:$0xff]  ;;  %v507_v22 = vstv %s1252_s6 }
  0x68   :  { %1429 = vmatmul.mubr.msk.f32.vlgmr.msra.gmra.mrb[0].mxu0 %vm160_vm1, %v149_v41  ;;  %v649_v32 = vld [vmem:[#allocation9 + $0x170] sm:$0xff]  ;;  %v1734_v33 = vpack.c.bf16 %v531_v30, %v530_v29  ;;  %v650_v34 = vld [vmem:[#allocation9 + $0x178] sm:$0xff]  ;;  %v618_v36 = vld [vmem:[#allocation9 + $0x80] sm:$0xff] }
  0x69   :  { %1693 = vmatpush3.bf16.msra.mxu0 %v1690_v35  ;;  %1431 = vmatprep.mubr.msk.f32.mxu0 %vm160_vm1, %v150_v45  ;;  %v1766_v35 = vpack.c.bf16 %v650_v34, %v649_v32  ;;  %v619_v38 = vld [vmem:[#allocation9 + $0x88] sm:$0xff]  ;;  %v876_v39 = vld [vmem:[#allocation10] sm:$0xff]  ;;  %v620_v34 = vld [vmem:[#allocation9 + $0x90] sm:$0xff] }
  0x6a   :  { %1695 = vmatprep.subr.bf16.mxu0 %v1694_v46  ;;  %1451 = vmatmul.mubr.msk.f32.vlgmr.msra.gmra.mrb[0].mxu1 %vm160_vm1, %v149_v41 }
  0x6b   :  { %1453 = vmatprep.mubr.msk.f32.mxu1 %vm160_vm1, %v150_v45  ;;  %1709 = vmatpush3.bf16.msra.mxu1 %v1706_v40  ;;  %v2175_v40 = vpack.c.bf16 %v619_v38, %v618_v36  ;;  %v621_v38 = vld [vmem:[#allocation9 + $0x98] sm:$0xff] }
  0x6c   :  { %1432 = vmatmul.mubr.msk.f32.gmra.mrb[2].mxu0 %vm160_vm1, %v151_v50  ;;  %1711 = vmatprep.subr.bf16.mxu1 %v1710_v49 }
  0x6d   :  { %1697 = vmatpush3.bf16.msra.mxu0 %v1694_v46  ;;  %1472 = vmatprep.mubr.msk.f32.mxu0 %vm160_vm1, %v148_v26  ;;  %v648_v26 = vld [vmem:[#allocation9 + $0x168] sm:$0xff]  ;;  %v102_v46 = vlaneseq }
  0x6e   :  { %1699 = vmatprep.subr.bf16.mxu0 %v1698_v51  ;;  %1454 = vmatmul.mubr.msk.f32.gmra.mrb[2].mxu1 %vm160_vm1, %v151_v50  ;;  %v1762_v28 = vpack.c.bf16 %v648_v26, %v647_v24 }
  0x6f   :  { %1713 = vmatpush3.bf16.msra.mxu1 %v1710_v49  ;;  %v103_v56 = vshrl.u32 %v102_v46, 7 }
  0x70   :  { %1715 = vmatprep.subr.bf16.mxu1 %v1714_v0 }
  0x71   :  { %1701 = vmatpush3.bf16.msra.mxu0 %v1698_v51  ;;  %v104_v62 = vadd.s32 8, %v103_v56  ;;  %vm107_vm7 = vcmp.eq.s32.totalorder %v103_v56, 0  ;;  %v105_v3 = vadd.s32 16, %v103_v56  ;;  %v106_v5 = vadd.s32 24, %v103_v56  ;;  %v881_v56 = vld [vmem:[#allocation10 + $0x28] sm:$0xff] }
  0x72   :  { %1703 = vmatprep.subr.bf16.mxu0 %v1702_v54 }
  0x73   :  { %1717 = vmatpush3.bf16.msra.mxu1 %v1714_v0  ;;  %vm112_vm8 = vcmp.eq.s32.totalorder %v104_v62, 15  ;;  %vm117_vm9 = vcmp.eq.s32.totalorder %v105_v3, 16  ;;  %vm126_vm10 = vcmp.eq.s32.totalorder %v106_v5, 31  ;;  %v625_v62 = vld [vmem:[#allocation9 + $0xb8] sm:$0xff]  ;;  %v991_v3 = vld [vmem:[#allocation10 + $0x80] sm:$0xff] }
  0x74   :  { %1719 = vmatprep.subr.bf16.mxu1 %v1718_v6  ;;  %v2190_v9 = vsel %vm112_vm8, 0.0, %v2024_v7  ;;  %v2194_v15 = vsel %vm117_vm9, 0.0, %v2024_v7  ;;  %v2196_v17 = vsel %vm126_vm10, 0.0, %v2024_v7 }
  0x75   :  { %1705 = vmatpush3.bf16.msra.mxu0 %v1702_v54 }
  0x76   :  { %1739 = vmatprep.subr.bf16.mxu0 %v1738_v57 }
  0x77   :  { %1721 = vmatpush3.bf16.msra.mxu1 %v1718_v6 }
  0x78   :  { %1473 = vmatmul.mubr.msk.f32.vlgmr.msra.gmra.mrb[4].mxu0 %vm160_vm1, %v149_v41  ;;  %1723 = vmatprep.subr.bf16.mxu1 %v1722_v12  ;;  %v877_v41 = vld [vmem:[#allocation10 + $0x8] sm:$0xff] }
  0x79   :  { %1475 = vmatprep.mubr.msk.f32.mxu0 %vm160_vm1, %v150_v45  ;;  %1741 = vmatpush3.bf16.msra.mxu0 %v1738_v57  ;;  %v2177_v42 = vpack.c.bf16 %v877_v41, %v876_v39  ;;  %v878_v39 = vld [vmem:[#allocation10 + $0x10] sm:$0xff]  ;;  %v879_v41 = vld [vmem:[#allocation10 + $0x18] sm:$0xff] }
  0x7a   :  { %1743 = vmatprep.subr.bf16.mxu0 %v1742_v60 }
  0x7b   :  { %1725 = vmatpush3.bf16.msra.mxu1 %v1722_v12 }
  0x7c   :  { %1476 = vmatmul.mubr.msk.f32.gmra.mrb[6].mxu0 %vm160_vm1, %v151_v50  ;;  %1727 = vmatprep.subr.bf16.mxu1 %v1726_v19 }
  0x7d   :  { %1745 = vmatpush3.bf16.msra.mxu0 %v1742_v60 }
  0x7e   :  { %1747 = vmatprep.subr.bf16.mxu0 %v1746_v2 }
  0x7f   :  { %1729 = vmatpush3.bf16.msra.mxu1 %v1726_v19  ;;  %v1265_v19 = vld [vmem:[%s2293_s3] ss:$0 sm:$0xff] }
  0x80   :  { %1731 = vmatprep.subr.bf16.mxu1 %v1730_v25 }
  0x81   :  { %1749 = vmatpush3.bf16.msra.mxu0 %v1746_v2 }
  0x82   :  { %1751 = vmatprep.subr.bf16.mxu0 %v1750_v8 }
  0x83   :  { %1733 = vmatpush3.bf16.msra.mxu1 %v1730_v25 }
  0x84   :  { %1735 = vmatprep.subr.bf16.mxu1 %v1734_v33 }
  0x85   :  { %1753 = vmatpush3.bf16.msra.mxu0 %v1750_v8  ;;  %v2188_v8 = vsel %vm107_vm7, 0.0, %v2024_v7  ;;  %v628_v7 = vld [vmem:[#allocation9 + $0xd0] sm:$0xff] }
  0x86   :  { %1755 = vmatprep.subr.bf16.mxu0 %v1754_v14 }
  0x87   :  { %1737 = vmatpush3.bf16.msra.mxu1 %v1734_v33 }
  0x88   :  { %1771 = vmatprep.subr.bf16.mxu1 %v2175_v40 }
  0x89   :  { %1757 = vmatpush3.bf16.msra.mxu0 %v1754_v14 }
  0x8a   :  { %1759 = vmatprep.subr.bf16.mxu0 %v1758_v21 }
  0x8d   :  { %1761 = vmatpush3.bf16.msra.mxu0 %v1758_v21 }
  0x8e   :  { %1763 = vmatprep.subr.bf16.mxu0 %v1762_v28 }
  0x91   :  { %1765 = vmatpush3.bf16.msra.mxu0 %v1762_v28 }
  0x92   :  { %1767 = vmatprep.subr.bf16.mxu0 %v1766_v35 }
  0x95   :  { %1769 = vmatpush3.bf16.msra.mxu0 %v1766_v35 }
  0x96   :  { %1803 = vmatprep.subr.bf16.mxu0 %v2177_v42 }
 0x13b   :  { %v1430_v43 = vpop.f32.mrb[0].mxu0 }
 0x13c   :  { %v367_v44 = vrot.slane %v1430_v43, 7  ;;  %v239_v45 = vpop.f32.mrb[1].mxu0 }
 0x13d   :  { %v366_v47 = vrot.slane %v239_v45, 7  ;;  %v1452_v48 = vpop.f32.mrb[0].mxu1 }
 0x13e   :  { %v388_v49 = vrot.slane %v1452_v48, 1  ;;  %v342_v50 = vpop.f32.mrb[1].mxu1  ;;  %v1774_v48 = vpack.c.bf16 %v621_v38, %v620_v34 }
 0x13f   :  { %v1433_v51 = vpop.f32.mrb[2].mxu0  ;;  %v387_v52 = vrot.slane %v342_v50, 1  ;;  %v368_v53 = vsel %vm365_vm5, %v366_v47, %v367_v44  ;;  %v377_v6 = vsel %vm365_vm5, 0.0, %v366_v47 }
 0x140   :  { %v371_v54 = vrot.slane %v1433_v51, 7  ;;  %v249_v55 = vpop.f32.mrb[3].mxu0  ;;  %v378_v11 = vmul.f32 %v377_v6, %v2188_v8 }
 0x141   :  { %v369_v57 = vrot.slane %v249_v55, 7  ;;  %v1455_v58 = vpop.f32.mrb[2].mxu1  ;;  %v389_v59 = vsel %vm386_vm6, %v387_v52, %v388_v49  ;;  %v622_v52 = vld [vmem:[#allocation9 + $0xa0] sm:$0xff] }
 0x142   :  { %v392_v60 = vrot.slane %v1455_v58, 1  ;;  %v352_v61 = vpop.f32.mrb[3].mxu1  ;;  %v880_v55 = vld [vmem:[#allocation10 + $0x20] sm:$0xff] }
 0x143   :  { %v390_v63 = vrot.slane %v352_v61, 1  ;;  %v372_v0 = vsel %vm365_vm5, %v369_v57, %v371_v54  ;;  %v370_v1 = vsel %vm365_vm5, %v367_v44, %v369_v57  ;;  %v1810_v61 = vpack.c.bf16 %v881_v56, %v880_v55 }
 0x144   :  { %v398_v18 = vsel %vm386_vm6, %v392_v60, 0.0  ;;  %v380_v25 = vmul.f32 %v370_v1, %v2194_v15  ;;  %v626_v1 = vld [vmem:[#allocation9 + $0xc0] sm:$0xff] }
 0x145   :  { %v391_v2 = vsel %vm386_vm6, %v388_v49, %v390_v63  ;;  %v393_v4 = vsel %vm386_vm6, %v390_v63, %v392_v60  ;;  %v402_v26 = vmul.f32 %v398_v18, %v2196_v17  ;;  %v1806_v49 = vpack.c.bf16 %v879_v41, %v878_v39  ;;  %v882_v63 = vld [vmem:[#allocation10 + $0x30] sm:$0xff]  ;;  %v986_v39 = vld [vmem:[#allocation10 + $0x60] sm:$0xff]  ;;  %v987_v41 = vld [vmem:[#allocation10 + $0x68] sm:$0xff] }
 0x146   :  { %v400_v12 = vmul.f32 %v391_v2, %v2190_v9  ;;  %v627_v2 = vld [vmem:[#allocation9 + $0xc8] sm:$0xff] }
 0x147   :  { %v1786_v5 = vpack.c.bf16 %v627_v2, %v626_v1 }
 0x14b   :  { %v1474_v10 = vpop.f32.mrb[4].mxu0 }
 0x14c   :  { %v475_v13 = vadd.f32 %v1474_v10, %v368_v53  ;;  %v469_v14 = vpop.f32.mrb[5].mxu0  ;;  %v623_v53 = vld [vmem:[#allocation9 + $0xa8] sm:$0xff]  ;;  %v629_v10 = vld [vmem:[#allocation9 + $0xd8] sm:$0xff] }
 0x14d   :  { %v470_v20 = vadd.f32 %v469_v14, %v378_v11  ;;  %v1778_v58 = vpack.c.bf16 %v623_v53, %v622_v52  ;;  %v993_v11 = vld [vmem:[#allocation10 + $0x90] sm:$0xff]  ;;  %v630_v14 = vld [vmem:[#allocation9 + $0xe0] sm:$0xff] }
 0x14e   :  { %v489_v21 = vadd.f32 %v475_v13, %v400_v12  ;;  %v994_v12 = vld [vmem:[#allocation10 + $0x98] sm:$0xff]  ;;  %v1790_v13 = vpack.c.bf16 %v629_v10, %v628_v7 }
 0x14f   :  { %v488_v23 = vadd.f32 %v470_v20, %v389_v59  ;;  %v1477_v24 = vpop.f32.mrb[6].mxu0  ;;  %v624_v59 = vld [vmem:[#allocation9 + $0xb0] sm:$0xff]  ;;  %v1822_v18 = vpack.c.bf16 %v994_v12, %v993_v11  ;;  %v995_v20 = vld [vmem:[#allocation10 + $0xa0] sm:$0xff] }
 0x150   :  { %v500_v28 = vadd.f32 %v1265_v19, %v489_v21  ;;  %v485_v29 = vadd.f32 %v1477_v24, %v372_v0  ;;  %v479_v30 = vpop.f32.mrb[7].mxu0  ;;  %v883_v0 = vld [vmem:[#allocation10 + $0x38] sm:$0xff]  ;;  %v996_v21 = vld [vmem:[#allocation10 + $0xa8] sm:$0xff]  ;;  %v632_v24 = vld [vmem:[#allocation9 + $0xf0] sm:$0xff] }
 0x151   :  { %v499_v32 = vadd.f32 %v1265_v19, %v488_v23  ;;  %v480_v33 = vadd.f32 %v479_v30, %v380_v25  ;;  %v1826_v23 = vpack.c.bf16 %v996_v21, %v995_v20  ;;  %v633_v25 = vld [vmem:[#allocation9 + $0xf8] sm:$0xff] }
 0x152   :  { %v509_v35 = vmul.f32 %v507_v22, %v500_v28  ;;  %v491_v36 = vadd.f32 %v485_v29, %v402_v26  ;;  %vm504_vm12 = vcmp.ge.f32.partialorder %v500_v28, 0.0  ;;  %v997_v26 = vld [vmem:[#allocation10 + $0xb0] sm:$0xff]  ;;  %v1798_v29 = vpack.c.bf16 %v633_v25, %v632_v24 }
 0x153   :  { %v490_v43 = vadd.f32 %v480_v33, %v393_v4  ;;  %vm503_vm11 = vcmp.ge.f32.partialorder %v499_v32, 0.0  ;;  %v508_v44 = vmul.f32 %v507_v22, %v499_v32  ;;  %v992_v4 = vld [vmem:[#allocation10 + $0x88] sm:$0xff] }
 0x154   :  { %v502_v45 = vadd.f32 %v1265_v19, %v491_v36  ;;  %v2204_v50 = vsel %vm504_vm12, %v500_v28, %v509_v35  ;;  %v1818_v6 = vpack.c.bf16 %v992_v4, %v991_v3  ;;  %v998_v28 = vld [vmem:[#allocation10 + $0xb8] sm:$0xff]  ;;  %v983_v33 = vld [vmem:[#allocation10 + $0x48] sm:$0xff]  ;;  %v984_v35 = vld [vmem:[#allocation10 + $0x50] sm:$0xff] }
 0x155   :  { %v501_v46 = vadd.f32 %v1265_v19, %v490_v43  ;;  %v512_v47 = vsel %vm503_vm11, %v499_v32, %v508_v44  ;;  %v631_v19 = vld [vmem:[#allocation9 + $0xe8] sm:$0xff]  ;;  %v1830_v30 = vpack.c.bf16 %v998_v28, %v997_v26  ;;  %v982_v32 = vld [vmem:[#allocation10 + $0x40] sm:$0xff]  ;;  %v985_v36 = vld [vmem:[#allocation10 + $0x58] sm:$0xff]  ;;  %v1842_v43 = vpack.c.bf16 %v987_v41, %v986_v39 }
 0x156   :  { %1510 = vmatprep.mubr.f32.mxu1 %v512_v47  ;;  %1548 = vmatprep.mubr.f32.mxu0 %v512_v47  ;;  %v511_v51 = vmul.f32 %v507_v22, %v502_v45  ;;  %vm506_vm14 = vcmp.ge.f32.partialorder %v502_v45, 0.0  ;;  %v1834_v34 = vpack.c.bf16 %v983_v33, %v982_v32  ;;  %v1838_v38 = vpack.c.bf16 %v985_v36, %v984_v35  ;;  %v988_v44 = vld [vmem:[#allocation10 + $0x70] sm:$0xff] }
 0x157   :  { %1511 = vmatmul.mubr.f32.vlgmr.msra.gmra.mrb[4].mxu1 %v2204_v50  ;;  %1549 = vmatmul.mubr.f32.vlgmr.msra.gmra.mrb[8].mxu0 %v2204_v50  ;;  %vm505_vm13 = vcmp.ge.f32.partialorder %v501_v46, 0.0  ;;  %v510_v54 = vmul.f32 %v507_v22, %v501_v46  ;;  %v1794_v22 = vpack.c.bf16 %v631_v19, %v630_v14 }
 0x158   :  { %1773 = vmatpush3.bf16.msra.mxu1 %v2175_v40  ;;  %1805 = vmatpush3.bf16.msra.mxu0 %v2177_v42  ;;  %v2214_v60 = vsel %vm506_vm14, %v502_v45, %v511_v51  ;;  %v1782_v40 = vpack.c.bf16 %v625_v62, %v624_v59  ;;  %v1814_v42 = vpack.c.bf16 %v883_v0, %v882_v63  ;;  %v989_v45 = vld [vmem:[#allocation10 + $0x78] sm:$0xff] }
 0x159   :  { %v2210_v57 = vsel %vm505_vm13, %v501_v46, %v510_v54  ;;  %1775 = vmatprep.subr.bf16.mxu1 %v1774_v48  ;;  %1807 = vmatprep.subr.bf16.mxu0 %v1806_v49  ;;  %v1846_v46 = vpack.c.bf16 %v989_v45, %v988_v44 }
 0x15a   :  { %1513 = vmatprep.mubr.f32.mxu1 %v2210_v57  ;;  %1551 = vmatprep.mubr.f32.mxu0 %v2210_v57 }
 0x15b   :  { %1514 = vmatmul.mubr.f32.gmra.mrb[6].mxu1 %v2214_v60  ;;  %1552 = vmatmul.mubr.f32.gmra.mrb[10].mxu0 %v2214_v60 }
 0x15c   :  { %1777 = vmatpush3.bf16.msra.mxu1 %v1774_v48  ;;  %1809 = vmatpush3.bf16.msra.mxu0 %v1806_v49 }
 0x15d   :  { %1586 = vmatprep.mubr.f32.mxu1 %v512_v47  ;;  %1779 = vmatprep.subr.bf16.mxu1 %v1778_v58 }
 0x15e   :  { %1811 = vmatprep.subr.bf16.mxu0 %v1810_v61  ;;  %1608 = vmatprep.mubr.msk.f32.mxu0 %vm160_vm1, %v2143_v16 }
 0x160   :  { %1781 = vmatpush3.bf16.msra.mxu1 %v1778_v58  ;;  %1813 = vmatpush3.bf16.msra.mxu0 %v1810_v61 }
 0x161   :  { %1783 = vmatprep.subr.bf16.mxu1 %v1782_v40  ;;  %1815 = vmatprep.subr.bf16.mxu0 %v1814_v42 }
 0x164   :  { %1785 = vmatpush3.bf16.msra.mxu1 %v1782_v40  ;;  %1817 = vmatpush3.bf16.msra.mxu0 %v1814_v42 }
 0x165   :  { %1787 = vmatprep.subr.bf16.mxu1 %v1786_v5  ;;  %1819 = vmatprep.subr.bf16.mxu0 %v1818_v6 }
 0x167   :  { %1609 = vmatmul.mubr.msk.f32.vlgmr.msra.gmra.mrb[12].mxu0 %vm160_vm1, %v2148_v27 }
 0x168   :  { %1789 = vmatpush3.bf16.msra.mxu1 %v1786_v5  ;;  %1821 = vmatpush3.bf16.msra.mxu0 %v1818_v6 }
 0x169   :  { %1611 = vmatprep.mubr.msk.f32.mxu0 %vm160_vm1, %v2151_v31  ;;  %1791 = vmatprep.subr.bf16.mxu1 %v1790_v13 }
 0x16a   :  { %1823 = vmatprep.subr.bf16.mxu0 %v1822_v18 }
 0x16b   :  { %1612 = vmatmul.mubr.msk.f32.gmra.mrb[14].mxu0 %vm160_vm1, %v2157_v37 }
 0x16c   :  { %1793 = vmatpush3.bf16.msra.mxu1 %v1790_v13  ;;  %1825 = vmatpush3.bf16.msra.mxu0 %v1822_v18  ;;  %v1266_v18 = vld [vmem:[%s2295_s5] ss:$0 sm:$0xff] }
 0x16d   :  { %1795 = vmatprep.subr.bf16.mxu1 %v1794_v22  ;;  %1827 = vmatprep.subr.bf16.mxu0 %v1826_v23 }
 0x16e   :  { %1630 = vmatprep.mubr.msk.f32.mxu0 %vm160_vm1, %v2143_v16 }
 0x170   :  { %1797 = vmatpush3.bf16.msra.mxu1 %v1794_v22  ;;  %1829 = vmatpush3.bf16.msra.mxu0 %v1826_v23 }
 0x171   :  { %1799 = vmatprep.subr.bf16.mxu1 %v1798_v29  ;;  %1831 = vmatprep.subr.bf16.mxu0 %v1830_v30 }
 0x174   :  { %1801 = vmatpush3.bf16.msra.mxu1 %v1798_v29  ;;  %1833 = vmatpush3.bf16.msra.mxu0 %v1830_v30 }
 0x175   :  { %1835 = vmatprep.subr.bf16.mxu1 %v1834_v34 }
 0x177   :  { %1587 = vmatmul.mubr.f32.vlgmr.msra.gmra.mrb[8].mxu1 %v2204_v50  ;;  %1631 = vmatmul.mubr.msk.f32.vlgmr.msra.gmra.mrb[16].mxu0 %vm160_vm1, %v2148_v27 }
 0x178   :  { %1589 = vmatprep.mubr.f32.mxu1 %v2210_v57  ;;  %1837 = vmatpush3.bf16.msra.mxu1 %v1834_v34 }
 0x179   :  { %1633 = vmatprep.mubr.msk.f32.mxu0 %vm160_vm1, %v2151_v31  ;;  %1839 = vmatprep.subr.bf16.mxu1 %v1838_v38 }
 0x17b   :  { %1590 = vmatmul.mubr.f32.gmra.mrb[10].mxu1 %v2214_v60  ;;  %1634 = vmatmul.mubr.msk.f32.gmra.mrb[18].mxu0 %vm160_vm1, %v2157_v37 }
 0x17c   :  { %1841 = vmatpush3.bf16.msra.mxu1 %v1838_v38  ;;  %1652 = vmatprep.mubr.msk.f32.mxu1 %vm160_vm1, %v2143_v16 }
 0x17d   :  { %1843 = vmatprep.subr.bf16.mxu1 %v1842_v43 }
 0x180   :  { %1845 = vmatpush3.bf16.msra.mxu1 %v1842_v43 }
 0x181   :  { %1847 = vmatprep.subr.bf16.mxu1 %v1846_v46 }
 0x184   :  { %1849 = vmatpush3.bf16.msra.mxu1 %v1846_v46 }
 0x187   :  { %1653 = vmatmul.mubr.msk.f32.vlgmr.msra.gmra.mrb[8].mxu1 %vm160_vm1, %v2148_v27 }
 0x188   :  { %1655 = vmatprep.mubr.msk.f32.mxu1 %vm160_vm1, %v2151_v31 }
 0x18b   :  { %1656 = vmatmul.mubr.msk.f32.gmra.mrb[10].mxu1 %vm160_vm1, %v2157_v37 }
 0x22a   :  { %v1512_v47 = vpop.f32.mrb[4].mxu1  ;;  %v1550_v48 = vpop.f32.mrb[8].mxu0 }
 0x22b   :  { %v741_v49 = vrot.slane %v1512_v47, 7  ;;  %v761_v50 = vrot.slane %v1550_v48, 1  ;;  %v598_v51 = vpop.f32.mrb[5].mxu1  ;;  %v717_v16 = vpop.f32.mrb[9].mxu0 }
 0x22c   :  { %v740_v52 = vrot.slane %v598_v51, 7  ;;  %v760_v53 = vrot.slane %v717_v16, 1 }
 0x22e   :  { %v742_v54 = vsel %vm365_vm5, %v740_v52, %v741_v49  ;;  %v751_v55 = vsel %vm365_vm5, 0.0, %v740_v52  ;;  %v762_v27 = vsel %vm386_vm6, %v760_v53, %v761_v50  ;;  %v1515_v56 = vpop.f32.mrb[6].mxu1  ;;  %v1553_v57 = vpop.f32.mrb[10].mxu0 }
 0x22f   :  { %v752_v31 = vmul.f32 %v751_v55, %v2188_v8  ;;  %v745_v58 = vrot.slane %v1515_v56, 7  ;;  %v765_v37 = vrot.slane %v1553_v57, 1  ;;  %v608_v59 = vpop.f32.mrb[7].mxu1  ;;  %v727_v60 = vpop.f32.mrb[11].mxu0  ;;  %v1279_v57 = vld [vmem:[%s2297_s7] ss:$0 sm:$0xff] }
 0x230   :  { %v743_v61 = vrot.slane %v608_v59, 7  ;;  %v763_v62 = vrot.slane %v727_v60, 1 }
 0x231   :  { %v1856_v63 = vadd.f32 %v762_v27, %v752_v31  ;;  %v771_v0 = vsel %vm386_vm6, %v765_v37, 0.0 }
 0x232   :  { %v775_v40 = vmul.f32 %v771_v0, %v2196_v17  ;;  %v744_v42 = vsel %vm365_vm5, %v741_v49, %v743_v61  ;;  %v746_v1 = vsel %vm365_vm5, %v743_v61, %v745_v58  ;;  %v764_v2 = vsel %vm386_vm6, %v761_v50, %v763_v62 }
 0x233   :  { %v754_v3 = vmul.f32 %v744_v42, %v2194_v15  ;;  %v766_v4 = vsel %vm386_vm6, %v763_v62, %v765_v37  ;;  %v773_v5 = vmul.f32 %v764_v2, %v2190_v9  ;;  %v1857_v28 = vadd.f32 %v1856_v63, %v1266_v18 }
 0x234   :  { %v1862_v6 = vadd.f32 %v775_v40, %v746_v1 }
 0x235   :  { %v1850_v7 = vadd.f32 %v773_v5, %v742_v54  ;;  %v1868_v10 = vadd.f32 %v766_v4, %v754_v3 }
 0x236   :  { %v1863_v32 = vadd.f32 %v1862_v6, %v1266_v18 }
 0x237   :  { %v1851_v19 = vadd.f32 %v1850_v7, %v1266_v18  ;;  %v1869_v38 = vadd.f32 %v1868_v10, %v1266_v18 }
 0x23a   :  { %v1610_v11 = vpop.f32.mrb[12].mxu0 }
 0x23b   :  { %v1089_v12 = vrot.slane %v1610_v11, 7  ;;  %v962_v13 = vpop.f32.mrb[13].mxu0 }
 0x23c   :  { %v1088_v14 = vrot.slane %v962_v13, 7 }
 0x23e   :  { %v1090_v20 = vsel %vm365_vm5, %v1088_v14, %v1089_v12  ;;  %v1099_v21 = vsel %vm365_vm5, 0.0, %v1088_v14  ;;  %v1613_v22 = vpop.f32.mrb[14].mxu0 }
 0x23f   :  { %v1100_v23 = vmul.f32 %v1099_v21, %v2188_v8  ;;  %v1093_v24 = vrot.slane %v1613_v22, 7  ;;  %v972_v25 = vpop.f32.mrb[15].mxu0  ;;  %v1852_v26 = vadd.f32 %v1851_v19, %v1090_v20 }
 0x240   :  { %v1091_v29 = vrot.slane %v972_v25, 7 }
 0x241   :  { %v1858_v30 = vadd.f32 %v1857_v28, %v1100_v23 }
 0x242   :  { %v1092_v33 = vsel %vm365_vm5, %v1089_v12, %v1091_v29  ;;  %v1094_v34 = vsel %vm365_vm5, %v1091_v29, %v1093_v24 }
 0x243   :  { %v1102_v35 = vmul.f32 %v1092_v33, %v2194_v15  ;;  %v1864_v36 = vadd.f32 %v1863_v32, %v1094_v34 }
 0x245   :  { %v1870_v39 = vadd.f32 %v1869_v38, %v1102_v35 }
 0x24a   :  { %v1632_v41 = vpop.f32.mrb[16].mxu0 }
 0x24b   :  { %v1109_v43 = vrot.slane %v1632_v41, 1  ;;  %v1065_v44 = vpop.f32.mrb[17].mxu0 }
 0x24c   :  { %v1108_v8 = vrot.slane %v1065_v44, 1 }
 0x24e   :  { %v1635_v45 = vpop.f32.mrb[18].mxu0  ;;  %v1110_v46 = vsel %vm386_vm6, %v1108_v8, %v1109_v43 }
 0x24f   :  { %v1113_v47 = vrot.slane %v1635_v45, 1  ;;  %v1075_v48 = vpop.f32.mrb[19].mxu0  ;;  %v1859_v49 = vadd.f32 %v1858_v30, %v1110_v46 }
 0x250   :  { %v1111_v50 = vrot.slane %v1075_v48, 1 }
 0x251   :  { %v1119_v51 = vsel %vm386_vm6, %v1113_v47, 0.0 }
 0x252   :  { %v1123_v16 = vmul.f32 %v1119_v51, %v2196_v17  ;;  %v1112_v15 = vsel %vm386_vm6, %v1109_v43, %v1111_v50  ;;  %v1114_v52 = vsel %vm386_vm6, %v1111_v50, %v1113_v47 }
 0x253   :  { %v1121_v53 = vmul.f32 %v1112_v15, %v2190_v9  ;;  %v1871_v54 = vadd.f32 %v1870_v39, %v1114_v52 }
 0x254   :  { %v1865_v55 = vadd.f32 %v1864_v36, %v1123_v16 }
 0x255   :  { %v1853_v27 = vadd.f32 %v1852_v26, %v1121_v53 }
 0x25a   :  { %v1654_v56 = vpop.f32.mrb[8].mxu1 }
 0x25b   :  { %v1854_v31 = vadd.f32 %v1853_v27, %v1654_v56  ;;  %v1190_v58 = vpop.f32.mrb[9].mxu1 }
 0x25c   :  { %v1860_v37 = vadd.f32 %v1859_v49, %v1190_v58 }
 0x25d   :  { %v1855_v59 = vadd.f32 %v1854_v31, %v1279_v57 }
 0x25e   :  { %v1861_v60 = vadd.f32 %v1860_v37, %v1279_v57  ;;  %v1657_v17 = vpop.f32.mrb[10].mxu1 }
 0x25f   :  { %1229 = vst [vmem:[#allocation12 + $0x8] sm:$0xff] %v1855_v59  ;;  %v1866_v61 = vadd.f32 %v1865_v55, %v1657_v17  ;;  %v1200_v62 = vpop.f32.mrb[11].mxu1 }
 0x260   :  { %1228 = vst [vmem:[#allocation12] sm:$0xff] %v1861_v60  ;;  %v1872_v9 = vadd.f32 %v1871_v54, %v1200_v62 }
 0x261   :  { %v1867_v63 = vadd.f32 %v1866_v61, %v1279_v57 }
 0x262   :  { %v1873_v0 = vadd.f32 %v1872_v9, %v1279_v57 }
 0x263   :  { %1231 = vst [vmem:[#allocation12 + $0x18] sm:$0xff] %v1867_v63 }
 0x264   :  { %1230 = vst [vmem:[#allocation12 + $0x10] sm:$0xff] %v1873_v0 }
 0x265   :  { %1996 = shalt.err (!%p1993_p11)
}
 0x266   :  { %s1997_s9 = scalar_lea.hbm %s2298_s8, 512 }
 0x267   :  { %p1998_p12 = scmp.ne.s32.totalorder %s2298_s8, %s1997_s9  ;;  %p2001_p13 = scmp.lt.u32.totalorder %s1997_s9, %s2298_s8 }
 0x269   :  { %p2003_p0 = pnand %p2001_p13, %p1998_p12 }
 0x26b   :  { %2006 = shalt.err (!%p2003_p0)
}
 0x26c   :  { %1243 = dma.vmem_to_hbm [thread:$0]  %s1238_s26, 512, %s2298_s8, [#allocation4], %s2019_s17, %s2019_s17, %s2020_s18  }
 0x26d   :  { %2015 = dma.done.wait [#allocation4], 512  }
 0x26e   :  { %2016 = vsyncadd [#allocation4], 4294966784 }
 0x26f   :  { %1247 = vsyncpa [#allocation3], 1 }
 0x270   :  { %1248 = vsyncpa [#allocation8], 1 }
 0x271   :  { %1249 = vsyncpa [#allocation11], 1 }
 0x272   :  { %1250 = vsyncpa [#allocation4], 1 }
 0x273   :  { %1251 = vsyncpa [#allocation5], 1 }

</bundles_post_ra>
